<compile_context>
chip_gen: v6e
topology: v6e:2x2x1
jax: 0.10.0
libtpu: 0.0.40
codegen_flags: <defaults>
</compile_context>

<pallas_src>
import numpy as np
import jax
import jax.numpy as jnp
from jax.experimental import pallas as pl
from jax.experimental.pallas import tpu as pltpu  # noqa: F401  (TPU backend)

INF = 32752.0


def _gelu(x):
    # tanh approximation (matches jax.nn.gelu default used by the prior port)
    return 0.5 * x * (1.0 + jnp.tanh(0.7978845608028654 * (x + 0.044715 * x * x * x)))


# --------------------------- fused Pallas kernels ----------------------------

def _tx_pool_kernel(x_ref, w_ref, b_ref, valid_ref, pooled_ref, h_ref):
    # x (B, L, Din), w (Din, H), b (1, H), valid (B, 1, L); statically unrolled over B.
    w = w_ref[...]
    bias = b_ref[...]
    for i in range(x_ref.shape[0]):
        h = _gelu(jnp.dot(x_ref[i], w, preferred_element_type=jnp.float32) + bias)   # (L, H)
        h_ref[i] = h
        v = valid_ref[i]                                                             # (1, L)
        s = jnp.dot(v, h, preferred_element_type=jnp.float32)                        # (1, H)
        denom = jnp.maximum(jnp.sum(v, axis=1, keepdims=True), 1.0)                  # (1, 1)
        pooled_ref[i] = s / denom


def pallas_tx_pool(x, W, b, valid):
    # TODO(synk): original TransformerLegacy (multi-head attention stack) not
    # available; simplified to Linear+GELU token encoder with masked mean pooling.
    B, L, Din = x.shape
    H = W.shape[1]
    pooled, h = pl.pallas_call(
        _tx_pool_kernel,
        out_shape=(jax.ShapeDtypeStruct((B, 1, H), jnp.float32),
                   jax.ShapeDtypeStruct((B, L, H), jnp.float32)),
        grid=(1,),
        in_specs=[pl.BlockSpec((B, L, Din), lambda i: (0, 0, 0)),
                  pl.BlockSpec((Din, H), lambda i: (0, 0)),
                  pl.BlockSpec((1, H), lambda i: (0, 0)),
                  pl.BlockSpec((B, 1, L), lambda i: (0, 0, 0))],
        out_specs=(pl.BlockSpec((B, 1, H), lambda i: (0, 0, 0)),
                   pl.BlockSpec((B, L, H), lambda i: (0, 0, 0))),
    )(x, W, b.reshape(1, H), valid)
    return pooled[:, 0, :], h


def _tx_kernel(x_ref, w_ref, b_ref, h_ref):
    w = w_ref[...]
    bias = b_ref[...]
    for i in range(x_ref.shape[0]):
        h_ref[i] = _gelu(jnp.dot(x_ref[i], w, preferred_element_type=jnp.float32) + bias)


def pallas_tx(x, W, b):
    B, L, Din = x.shape
    H = W.shape[1]
    return pl.pallas_call(
        _tx_kernel,
        out_shape=jax.ShapeDtypeStruct((B, L, H), jnp.float32),
        grid=(1,),
        in_specs=[pl.BlockSpec((B, L, Din), lambda i: (0, 0, 0)),
                  pl.BlockSpec((Din, H), lambda i: (0, 0)),
                  pl.BlockSpec((1, H), lambda i: (0, 0))],
        out_specs=pl.BlockSpec((B, L, H), lambda i: (0, 0, 0)),
    )(x, W, b.reshape(1, H))


def _gcn_layer_kernel(e_ref, x_ref, w_ref, b_ref, o_ref):
    # fused  gelu((A @ X) @ W + b)  for the whole batch, all operands VMEM-resident
    w = w_ref[...]
    bias = b_ref[...]
    for i in range(x_ref.shape[0]):
        agg = jnp.dot(e_ref[i], x_ref[i], preferred_element_type=jnp.float32)   # (N,N)@(N,H)
        h = jnp.dot(agg, w, preferred_element_type=jnp.float32) + bias
        o_ref[i] = _gelu(h)


def pallas_gcn_layer(edges, x, W, b):
    B, N, Hin = x.shape
    Hout = W.shape[1]
    return pl.pallas_call(
        _gcn_layer_kernel,
        out_shape=jax.ShapeDtypeStruct((B, N, Hout), jnp.float32),
        grid=(1,),
        in_specs=[pl.BlockSpec((B, N, N), lambda i: (0, 0, 0)),
                  pl.BlockSpec((B, N, Hin), lambda i: (0, 0, 0)),
                  pl.BlockSpec((Hin, Hout), lambda i: (0, 0)),
                  pl.BlockSpec((1, Hout), lambda i: (0, 0))],
        out_specs=pl.BlockSpec((B, N, Hout), lambda i: (0, 0, 0)),
    )(edges, x, W, b.reshape(1, Hout))


def gcn_encoder(layers, x, edges):
    # TODO(synk): GCNEncoder attention variant / dropout internals not available;
    # plain per-layer  gelu(A @ X @ W + b), eval mode (dropout disabled).
    h = x
    for (W, b) in layers:
        h = pallas_gcn_layer(edges, h, W, b)
    return h


def _pool_role_kernel(emb_ref, mask_ref, role_ref, o_ref):
    # masked max-pool over words fused with role-embedding scaling; verbs+nouns together
    for i in range(emb_ref.shape[0]):
        emb = emb_ref[i]      # (L, D)
        mask = mask_ref[i]    # (P, L)
        masked = jnp.where(mask[:, :, None] != 0, emb[None, :, :], -INF)
        o_ref[i] = jnp.max(masked, axis=1) * role_ref[i]


def pallas_pool_role(word_embeds, masks, role_vecs):
    B, L, D = word_embeds.shape
    P = masks.shape[1]
    return pl.pallas_call(
        _pool_role_kernel,
        out_shape=jax.ShapeDtypeStruct((B, P, D), jnp.float32),
        grid=(1,),
        in_specs=[pl.BlockSpec((B, L, D), lambda i: (0, 0, 0)),
                  pl.BlockSpec((B, P, L), lambda i: (0, 0, 0)),
                  pl.BlockSpec((B, P, D), lambda i: (0, 0, 0))],
        out_specs=pl.BlockSpec((B, P, D), lambda i: (0, 0, 0)),
    )(word_embeds, masks, role_vecs)


def _node_attn_kernel(x_ref, pw_ref, pb_ref, vemb_ref, nemb_ref,
                      vpad_ref, npad_ref, vout_ref, nout_ref):
    # scores = gelu(pooling_ft(x)) via VPU multiply + lane reduce (no MXU needed),
    # then masked softmax over verb / noun nodes and weighted sums, all in-VMEM.
    pw = pw_ref[...]          # (1, H)
    pb = pb_ref[...]          # (1, 1)
    Pv = vemb_ref.shape[1]
    for i in range(x_ref.shape[0]):
        x = x_ref[i]                                                  # (N, H)
        s = _gelu(jnp.sum(x * pw, axis=1, keepdims=True) + pb)        # (N, 1)

        sv = s[1:1 + Pv, :]                                           # (Pv, 1)
        sv = jnp.where(vpad_ref[i] != 0, jnp.float32(-1e18), sv)
        sv = sv - jnp.max(sv, axis=0, keepdims=True)
        ev = jnp.exp(sv)
        pv = ev * pl.reciprocal(jnp.sum(ev, axis=0, keepdims=True), approx=True)
        vout_ref[i] = jnp.sum(vemb_ref[i] * pv, axis=0, keepdims=True)

        sn = s[1 + Pv:, :]                                            # (Pn, 1)
        sn = jnp.where(npad_ref[i] != 0, jnp.float32(-1e18), sn)
        sn = sn - jnp.max(sn, axis=0, keepdims=True)
        en = jnp.exp(sn)
        pn = en * pl.reciprocal(jnp.sum(en, axis=0, keepdims=True), approx=True)
        nout_ref[i] = jnp.sum(nemb_ref[i] * pn, axis=0, keepdims=True)


def pallas_node_attn_pool(node4, pW, pb, vemb, nemb, vpad, npad):
    B, N, H = node4.shape
    Pv = vemb.shape[1]
    Pn = nemb.shape[1]
    vout, nout = pl.pallas_call(
        _node_attn_kernel,
        out_shape=(jax.ShapeDtypeStruct((B, 1, H), jnp.float32),
                   jax.ShapeDtypeStruct((B, 1, H), jnp.float32)),
        grid=(1,),
        in_specs=[pl.BlockSpec((B, N, H), lambda i: (0, 0, 0)),
                  pl.BlockSpec((1, H), lambda i: (0, 0)),
                  pl.BlockSpec((1, 1), lambda i: (0, 0)),
                  pl.BlockSpec((B, Pv, H), lambda i: (0, 0, 0)),
                  pl.BlockSpec((B, Pn, H), lambda i: (0, 0, 0)),
                  pl.BlockSpec((B, Pv, 1), lambda i: (0, 0, 0)),
                  pl.BlockSpec((B, Pn, 1), lambda i: (0, 0, 0))],
        out_specs=(pl.BlockSpec((B, 1, H), lambda i: (0, 0, 0)),
                   pl.BlockSpec((B, 1, H), lambda i: (0, 0, 0))),
    )(node4, pW.reshape(1, H), pb.reshape(1, 1), vemb, nemb, vpad, npad)
    return vout[:, 0, :], nout[:, 0, :]


def _disc_kernel(c_ref, wT_ref, h_ref, bias_ref, o_ref):
    # DGI-style bilinear discriminator: logit[b, n] = h[b, n] . (c[b] @ W^T) + bias.
    # pos/neg rows are pre-stacked along the node axis; lane reduce instead of bmm.
    wT = wT_ref[...]
    bias = bias_ref[...]
    for i in range(c_ref.shape[0]):
        wc = jnp.dot(c_ref[pl.ds(i, 1), :], wT, preferred_element_type=jnp.float32)   # (1, H)
        o_ref[i] = jnp.sum(h_ref[i] * wc, axis=1, keepdims=True) + bias               # (2M, 1)


def pallas_discriminator(c, h_pos, h_neg, W, bias):
    # TODO(synk): original Discriminator internals unavailable; bilinear stand-in
    # (same semantics as the previously accepted port).
    B, H = c.shape
    M = h_pos.shape[1]
    h_all = jnp.concatenate([h_pos, h_neg], axis=1)                # (B, 2M, H)
    out = pl.pallas_call(
        _disc_kernel,
        out_shape=jax.ShapeDtypeStruct((B, 2 * M, 1), jnp.float32),
        grid=(1,),
        in_specs=[pl.BlockSpec((B, H), lambda i: (0, 0)),
                  pl.BlockSpec((H, H), lambda i: (0, 0)),
                  pl.BlockSpec((B, 2 * M, H), lambda i: (0, 0, 0)),
                  pl.BlockSpec((1, 1), lambda i: (0, 0))],
        out_specs=pl.BlockSpec((B, 2 * M, 1), lambda i: (0, 0, 0)),
    )(c, W.T, h_all, jnp.asarray(bias, jnp.float32).reshape(1, 1))
    return out[:, :, 0]


# --------------------------- JAX glue ----------------------------------------

def sequence_mask_inverse(lens, max_len):
    # True where padded (framework.ops.sequence_mask(..., inverse=True))
    return jnp.arange(max_len)[None, :] >= lens[:, None]


def bce_with_logits(logits, labels):
    return jnp.mean(jnp.maximum(logits, 0.0) - logits * labels
                    + jnp.log1p(jnp.exp(-jnp.abs(logits))))


# --------------------------- full forward ------------------------------------

class Config:
    dim_word = 32
    rnn_hidden_size = 32
    num_roles = 8
    gcn_num_layers = 1
    gcn_attention = False
    node_num = 4


def init_params(key, cfg):
    D, H = cfg.dim_word, cfg.rnn_hidden_size
    ks = jax.random.split(key, 12)

    def dense(k, i, o):
        kw, kb = jax.random.split(k)
        return (0.05 * jax.random.normal(kw, (i, o), jnp.float32),
                0.05 * jax.random.normal(kb, (o,), jnp.float32))

    return {
        "transformer_local": dense(ks[0], D, H),
        "transformer_global": dense(ks[1], H, H),
        "role_embedding": 0.05 * jax.random.normal(ks[2], (cfg.num_roles, H), jnp.float32),
        "gcn": [dense(ks[3], H, H) for _ in range(cfg.gcn_num_layers)],
        "gcn_global": [dense(ks[4], H, H) for _ in range(cfg.gcn_num_layers)],
        "gcn_pooling": [dense(ks[5], H, H) for _ in range(cfg.gcn_num_layers)],
        "pooling_ft": dense(ks[6], H, 1),
        "disc": {"W": 0.05 * jax.random.normal(ks[7], (H, H), jnp.float32),
                 "bias": jnp.float32(0.0)},
        "disc_global": {"W": 0.05 * jax.random.normal(ks[8], (H, H), jnp.float32),
                        "bias": jnp.float32(0.0)},
    }


def role_graph_encoder_forward(params, cfg, para_embs, para_lens, sent_embs,
                               sent_lens, verb_masks, noun_masks, node_roles,
                               rel_edges, sent_nums, gedges):
    rng = np.random.RandomState(0)   # deterministic stand-in for np.random.permutation

    batch_size, plen, _ = para_embs.shape
    hidden_dim = cfg.rnn_hidden_size
    slen = sent_embs.shape[1]
    total_sents = sent_embs.shape[0]
    max_sent_len = max(sent_nums)
    max_dataclip_len = cfg.node_num

    tlW, tlb = params["transformer_local"]
    tgW, tgb = params["transformer_global"]

    # ---- local transformer: para + sents fused into ONE launch --------------
    mask1 = sequence_mask_inverse(para_lens, plen)
    mask2 = sequence_mask_inverse(sent_lens, slen)
    valid1 = (~mask1).astype(jnp.float32)[:, None, :]               # (batch, 1, plen)
    valid2 = (~mask2).astype(jnp.float32)[:, None, :]               # (T, 1, slen)
    if plen == slen and para_embs.shape[2] == sent_embs.shape[2]:
        pooled_all, h_all = pallas_tx_pool(
            jnp.concatenate([para_embs, sent_embs], axis=0), tlW, tlb,
            jnp.concatenate([valid1, valid2], axis=0))
        para_embeds1 = pooled_all[:batch_size]
        sent_ctx_embeds1 = pooled_all[batch_size:]
        word_embeds = h_all[batch_size:]
    else:
        para_embeds1, _ = pallas_tx_pool(para_embs, tlW, tlb, valid1)
        sent_ctx_embeds1, word_embeds = pallas_tx_pool(sent_embs, tlW, tlb, valid2)

    # ---- verb/noun phrase max-pool + role scaling (single fused launch) -----
    num_verbs = verb_masks.shape[1]
    num_nouns = noun_masks.shape[1]
    masks_all = jnp.concatenate([verb_masks, noun_masks], axis=1).astype(jnp.float32)
    role_vecs = params["role_embedding"][node_roles]                # (T, Pv+Pn, H)
    phrase_ctx = pallas_pool_role(word_embeds, masks_all, role_vecs)
    verb_ctx_embeds1 = phrase_ctx[:, :num_verbs]
    noun_ctx_embeds1 = phrase_ctx[:, num_verbs:]

    # ---- local GCN: positives and shuffled negatives stacked into one call --
    node_ctx_embeds2 = jnp.concatenate(
        [sent_ctx_embeds1[:, None, :], verb_ctx_embeds1, noun_ctx_embeds1], axis=1)
    idx_local_mot = rng.permutation(verb_ctx_embeds1.shape[1])
    idx_local_obj = rng.permutation(noun_ctx_embeds1.shape[1])
    node_embeds_neg = jnp.concatenate(
        [sent_ctx_embeds1[:, None, :],
         verb_ctx_embeds1[:, idx_local_mot, :],
         noun_ctx_embeds1[:, idx_local_obj, :]], axis=1)
    stacked = gcn_encoder(params["gcn"],
                          jnp.concatenate([node_ctx_embeds2, node_embeds_neg], axis=0),
                          jnp.concatenate([rel_edges, rel_edges], axis=0))
    node_ctx_embeds3 = stacked[:total_sents]
    node_ctx_neg = stacked[total_sents:]

    sent_ctx_embeds2 = node_ctx_embeds3[:, 0]
    verb_ctx_embeds2 = node_ctx_embeds3[:, 1:1 + num_verbs]
    noun_ctx_embeds2 = node_ctx_embeds3[:, 1 + num_verbs:]
    verb_neg = node_ctx_neg[:, 1:1 + num_verbs]
    noun_neg = node_ctx_neg[:, 1 + num_verbs:]

    # ---- pooling GCN + fused attention pooling over verb / noun nodes -------
    node_ctx_embeds4 = gcn_encoder(params["gcn_pooling"], node_ctx_embeds3, rel_edges)
    pW, pb = params["pooling_ft"]
    verb_lens = jnp.sum(verb_masks, axis=2)
    noun_lens = jnp.sum(noun_masks, axis=2)
    mask3 = sequence_mask_inverse(jnp.sum((verb_lens > 0).astype(jnp.int32), axis=1), num_verbs)
    mask4 = sequence_mask_inverse(jnp.sum((noun_lens > 0).astype(jnp.int32), axis=1), num_nouns)
    verb_ctx_embeds, noun_ctx_embeds = pallas_node_attn_pool(
        node_ctx_embeds4, pW, pb, verb_ctx_embeds2, noun_ctx_embeds2,
        mask3.astype(jnp.float32)[:, :, None], mask4.astype(jnp.float32)[:, :, None])

    # ---- local discriminators (pos/neg stacked inside each launch) ----------
    c_local_mot = jax.nn.sigmoid(verb_ctx_embeds)
    c_local_obj = jax.nn.sigmoid(noun_ctx_embeds)
    ret_local_mot = pallas_discriminator(c_local_mot, verb_ctx_embeds2, verb_neg,
                                         params["disc"]["W"], params["disc"]["bias"])
    ret_local_obj = pallas_discriminator(c_local_obj, noun_ctx_embeds2, noun_neg,
                                         params["disc"]["W"], params["disc"]["bias"])

    lbl_mot = jnp.concatenate([jnp.ones((total_sents, num_verbs)),
                               jnp.zeros((total_sents, num_verbs))], axis=1)
    ret_local_mot_loss = bce_with_logits(ret_local_mot, lbl_mot)
    lbl_obj = jnp.concatenate([jnp.ones((total_sents, num_nouns)),
                               jnp.zeros((total_sents, num_nouns))], axis=1)
    ret_local_obj_loss = bce_with_logits(ret_local_obj, lbl_obj)

    # ---- scatter sentences back to (batch, max_sent_len, hidden) ------------
    # per-batch dynamic-update-slice loop replaced by ONE static gather
    offsets = np.concatenate([[0], np.cumsum(sent_nums)]).astype(np.int64)
    gather_idx = np.full((batch_size, max_sent_len), total_sents, np.int32)
    for bnum, clip_len in enumerate(sent_nums):
        gather_idx[bnum, :clip_len] = np.arange(offsets[bnum], offsets[bnum] + clip_len)
    sent_emb_lens = jnp.array(list(sent_nums), jnp.int32)

    stacked_vals = jnp.stack([sent_ctx_embeds2, verb_ctx_embeds, noun_ctx_embeds], axis=0)
    stacked_vals = jnp.concatenate(
        [stacked_vals, jnp.zeros((3, 1, hidden_dim), jnp.float32)], axis=1)   # pad row
    gathered = stacked_vals[:, jnp.asarray(gather_idx)]             # (3, batch, L, H)

    # ---- global transformer: sent/verb/noun stacked into one launch ---------
    h_global = pallas_tx(gathered.reshape(3 * batch_size, max_sent_len, hidden_dim),
                         tgW, tgb)
    noun_emb_reshape2 = h_global[2 * batch_size:]   # only the last in-place write survives

    # NOTE: reproduce PyTorch in-place aliasing: sent/verb/noun_emb_reshape3 all
    # alias the SAME tensor, so every one of them holds the last in-place write
    # (the noun values).
    aliased = jnp.zeros((batch_size, max_dataclip_len, hidden_dim), jnp.float32)
    aliased = aliased.at[:, :max_sent_len].set(noun_emb_reshape2)
    sent_emb_reshape3 = verb_emb_reshape3 = noun_emb_reshape3 = aliased

    # ---- global GCN: positives and negatives stacked into one call ----------
    new_emb = jnp.concatenate([para_embeds1[:, None, :], sent_emb_reshape3,
                               verb_emb_reshape3, noun_emb_reshape3], axis=1)
    idx_global_seg = rng.permutation(sent_emb_reshape3.shape[1])
    idx_global_mot = rng.permutation(verb_emb_reshape3.shape[1])
    idx_global_obj = rng.permutation(noun_emb_reshape3.shape[1])
    new_emb_neg = jnp.concatenate([para_embeds1[:, None, :],
                                   sent_emb_reshape3[:, idx_global_seg, :],
                                   verb_emb_reshape3[:, idx_global_mot, :],
                                   noun_emb_reshape3[:, idx_global_obj, :]], axis=1)
    stacked_g = gcn_encoder(params["gcn_global"],
                            jnp.concatenate([new_emb, new_emb_neg], axis=0),
                            jnp.concatenate([gedges, gedges], axis=0))
    new_emb_g = stacked_g[:batch_size]
    new_neg = stacked_g[batch_size:]

    para_embeds = new_emb_g[:, 0]
    sent_emb_reshape4 = new_emb_g[:, 1:1 + max_dataclip_len]
    verb_emb_reshape4 = new_emb_g[:, 1 + max_dataclip_len:1 + 2 * max_dataclip_len]
    noun_emb_reshape4 = new_emb_g[:, 1 + 2 * max_dataclip_len:]
    seg_emb_neg = new_neg[:, 1:1 + max_dataclip_len]
    mot_emb_neg = new_neg[:, 1 + max_dataclip_len:1 + 2 * max_dataclip_len]
    obj_emb_neg = new_neg[:, 1 + 2 * max_dataclip_len:]

    len_div = sent_emb_lens[:, None].astype(jnp.float32)
    sent_emb_reshape = jnp.sum(sent_emb_reshape4[:, :max_sent_len], axis=1) / len_div
    verb_emb_reshape = jnp.sum(verb_emb_reshape4[:, :max_sent_len], axis=1) / len_div
    noun_emb_reshape = jnp.sum(noun_emb_reshape4[:, :max_sent_len], axis=1) / len_div

    fusion_embeds = jnp.concatenate(
        [para_embeds, sent_emb_reshape, verb_emb_reshape, noun_emb_reshape], axis=-1)

    # ---- global discriminators: seg/mot/obj stacked into one launch ---------
    c_seg_global = jax.nn.sigmoid(sent_emb_reshape)
    c_mot_global = jax.nn.sigmoid(verb_emb_reshape)
    c_obj_global = jax.nn.sigmoid(noun_emb_reshape)
    logits_g = pallas_discriminator(
        jnp.concatenate([c_seg_global, c_mot_global, c_obj_global], axis=0),
        jnp.concatenate([sent_emb_reshape4, verb_emb_reshape4, noun_emb_reshape4], axis=0),
        jnp.concatenate([seg_emb_neg, mot_emb_neg, obj_emb_neg], axis=0),
        params["disc_global"]["W"], params["disc_global"]["bias"])
    ret_global_seg = logits_g[:batch_size]
    ret_global_mot = logits_g[batch_size:2 * batch_size]
    ret_global_obj = logits_g[2 * batch_size:]

    lbl_g = jnp.concatenate([jnp.ones((batch_size, max_dataclip_len)),
                             jnp.zeros((batch_size, max_dataclip_len))], axis=1)
    ret_global_seg_loss = bce_with_logits(ret_global_seg, lbl_g)
    ret_global_mot_loss = bce_with_logits(ret_global_mot, lbl_g)
    ret_global_obj_loss = bce_with_logits(ret_global_obj, lbl_g)

    return (fusion_embeds, para_embeds, sent_ctx_embeds2, verb_ctx_embeds,
            noun_ctx_embeds, ret_local_mot_loss, ret_local_obj_loss,
            ret_global_seg_loss, ret_global_mot_loss, ret_global_obj_loss)


# --------------------------- main ---------------------------------------------

if __name__ == "__main__":
    cfg = Config()
    key = jax.random.PRNGKey(0)
    kp, ks, kv, kn, kr, ke, kg, kparam = jax.random.split(key, 8)

    batch_size = 2
    plen = 8
    sent_nums = [2, 3]                     # python list, sum = total_sents
    total_sents = sum(sent_nums)
    slen = 8
    num_verbs, num_nouns = 3, 4
    num_nodes = 1 + num_verbs + num_nouns
    gnodes = 1 + 3 * cfg.node_num

    para_embs = jax.random.normal(kp, (batch_size, plen, cfg.dim_word), jnp.float32)
    para_lens = jnp.array([6, 8], jnp.int32)
    sent_embs = jax.random.normal(ks, (total_sents, slen, cfg.dim_word), jnp.float32)
    sent_lens = jnp.array([5, 8, 6, 7, 4], jnp.int32)
    verb_masks = jax.random.bernoulli(kv, 0.5, (total_sents, num_verbs, slen)).astype(jnp.int32)
    noun_masks = jax.random.bernoulli(kn, 0.5, (total_sents, num_nouns, slen)).astype(jnp.int32)
    node_roles = jax.random.randint(kr, (total_sents, num_verbs + num_nouns), 0, cfg.num_roles)
    rel_edges = jax.random.uniform(ke, (total_sents, num_nodes, num_nodes), jnp.float32)
    gedges = jax.random.uniform(kg, (batch_size, gnodes, gnodes), jnp.float32)

    params = init_params(kparam, cfg)

    outputs = role_graph_encoder_forward(
        params, cfg, para_embs, para_lens, sent_embs, sent_lens,
        verb_masks, noun_masks, node_roles, rel_edges, sent_nums, gedges)

    outputs = jax.block_until_ready(outputs)
    print("KERNEL_OK")
</pallas_src>

<mosaic_0001>
module attributes {stable_mosaic.version = 11 : i64} {
  func.func @_tx_pool_kernel(%arg0: i32, %arg1: memref<7x8x32xf32, #tpu.memory_space<vmem>>, %arg2: memref<32x32xf32, #tpu.memory_space<vmem>>, %arg3: memref<1x32xf32, #tpu.memory_space<vmem>>, %arg4: memref<7x1x8xf32, #tpu.memory_space<vmem>>, %arg5: memref<7x1x32xf32, #tpu.memory_space<vmem>>, %arg6: memref<7x8x32xf32, #tpu.memory_space<vmem>>) attributes {dimension_semantics = [#tpu.dimension_semantics<arbitrary>], iteration_bounds = array<i64: 1>, scalar_prefetch = 0 : i64, scratch_operands = 0 : i64, tpu.core_type = #tpu.core_type<tc>, window_params = [{pipeline_mode = #tpu.pipeline_mode<synchronous>, transform_indices = @transform_0, window_bounds = array<i64: 7, 8, 32>}, {pipeline_mode = #tpu.pipeline_mode<synchronous>, transform_indices = @transform_1, window_bounds = array<i64: 32, 32>}, {pipeline_mode = #tpu.pipeline_mode<synchronous>, transform_indices = @transform_2, window_bounds = array<i64: 1, 32>}, {pipeline_mode = #tpu.pipeline_mode<synchronous>, transform_indices = @transform_3, window_bounds = array<i64: 7, 1, 8>}, {pipeline_mode = #tpu.pipeline_mode<synchronous>, transform_indices = @transform_4, window_bounds = array<i64: 7, 1, 32>}, {pipeline_mode = #tpu.pipeline_mode<synchronous>, transform_indices = @transform_5, window_bounds = array<i64: 7, 8, 32>}]} {
    %c0 = arith.constant 0 : index
    %c0_0 = arith.constant 0 : index
    %0 = vector.load %arg2[%c0, %c0_0] : memref<32x32xf32, #tpu.memory_space<vmem>>, vector<32x32xf32>
    %c0_1 = arith.constant 0 : index
    %c0_2 = arith.constant 0 : index
    %1 = vector.load %arg3[%c0_1, %c0_2] : memref<1x32xf32, #tpu.memory_space<vmem>>, vector<1x32xf32>
    %c0_3 = arith.constant 0 : index
    %c0_4 = arith.constant 0 : index
    %c0_5 = arith.constant 0 : index
    %2 = vector.load %arg1[%c0_3, %c0_4, %c0_5] : memref<7x8x32xf32, #tpu.memory_space<vmem>>, vector<1x8x32xf32>
    %3 = vector.shape_cast %2 : vector<1x8x32xf32> to vector<8x32xf32>
    %cst = arith.constant dense<0.000000e+00> : vector<8x32xf32>
    %4 = tpu.matmul %3, %0, %cst {dimension_numbers = #tpu.dot_dimension_numbers<[1], [0], [0], [1], [0, 0, 1, 1], [], []>} : vector<8x32xf32>, vector<32x32xf32>, vector<8x32xf32> -> vector<8x32xf32>
    %5 = vector.broadcast %1 : vector<1x32xf32> to vector<8x32xf32>
    %6 = arith.addf %4, %5 : vector<8x32xf32>
    %cst_6 = arith.constant 5.000000e-01 : f32
    %7 = vector.broadcast %cst_6 : f32 to vector<8x32xf32>
    %8 = arith.mulf %7, %6 : vector<8x32xf32>
    %cst_7 = arith.constant 4.471500e-02 : f32
    %9 = vector.broadcast %cst_7 : f32 to vector<8x32xf32>
    %10 = arith.mulf %9, %6 : vector<8x32xf32>
    %11 = arith.mulf %10, %6 : vector<8x32xf32>
    %12 = arith.mulf %11, %6 : vector<8x32xf32>
    %13 = arith.addf %6, %12 : vector<8x32xf32>
    %cst_8 = arith.constant 0.797884583 : f32
    %14 = vector.broadcast %cst_8 : f32 to vector<8x32xf32>
    %15 = arith.mulf %14, %13 : vector<8x32xf32>
    %16 = math.tanh %15 : vector<8x32xf32>
    %cst_9 = arith.constant 1.000000e+00 : f32
    %17 = vector.broadcast %cst_9 : f32 to vector<8x32xf32>
    %18 = arith.addf %17, %16 : vector<8x32xf32>
    %19 = arith.mulf %8, %18 : vector<8x32xf32>
    %c0_10 = arith.constant 0 : index
    %c0_11 = arith.constant 0 : index
    %c0_12 = arith.constant 0 : index
    %20 = vector.load %arg6[%c0_10, %c0_11, %c0_12] : memref<7x8x32xf32, #tpu.memory_space<vmem>>, vector<1x8x32xf32>
    %21 = vector.shape_cast %20 : vector<1x8x32xf32> to vector<8x32xf32>
    %22 = vector.shape_cast %19 : vector<8x32xf32> to vector<1x8x32xf32>
    tpu.vector_store %arg6[%c0_10, %c0_11, %c0_12], %22 {strides = array<i32>} : memref<7x8x32xf32, #tpu.memory_space<vmem>>, vector<1x8x32xf32>,
    %c0_13 = arith.constant 0 : index
    %c0_14 = arith.constant 0 : index
    %c0_15 = arith.constant 0 : index
    %23 = vector.load %arg4[%c0_13, %c0_14, %c0_15] : memref<7x1x8xf32, #tpu.memory_space<vmem>>, vector<1x1x8xf32>
    %24 = vector.shape_cast %23 : vector<1x1x8xf32> to vector<1x8xf32>
    %cst_16 = arith.constant dense<0.000000e+00> : vector<1x32xf32>
    %25 = tpu.matmul %24, %19, %cst_16 {dimension_numbers = #tpu.dot_dimension_numbers<[1], [0], [0], [1], [0, 0, 1, 1], [], []>} : vector<1x8xf32>, vector<8x32xf32>, vector<1x32xf32> -> vector<1x32xf32>
    %cst_17 = arith.constant dense<0.000000e+00> : vector<1xf32>
    %26 = vector.multi_reduction <add>, %24, %cst_17 [1] : vector<1x8xf32> to vector<1xf32>
    %27 = vector.shape_cast %26 : vector<1xf32> to vector<1x1xf32>
    %cst_18 = arith.constant 1.000000e+00 : f32
    %28 = vector.broadcast %cst_18 : f32 to vector<1x1xf32>
    %29 = arith.maximumf %27, %28 : vector<1x1xf32>
    %30 = vector.broadcast %29 : vector<1x1xf32> to vector<1x32xf32>
    %31 = arith.divf %25, %30 : vector<1x32xf32>
    %c0_19 = arith.constant 0 : index
    %c0_20 = arith.constant 0 : index
    %c0_21 = arith.constant 0 : index
    %32 = vector.load %arg5[%c0_19, %c0_20, %c0_21] : memref<7x1x32xf32, #tpu.memory_space<vmem>>, vector<1x1x32xf32>
    %33 = vector.shape_cast %32 : vector<1x1x32xf32> to vector<1x32xf32>
    %34 = vector.shape_cast %31 : vector<1x32xf32> to vector<1x1x32xf32>
    tpu.vector_store %arg5[%c0_19, %c0_20, %c0_21], %34 {strides = array<i32>} : memref<7x1x32xf32, #tpu.memory_space<vmem>>, vector<1x1x32xf32>,
    %c1 = arith.constant 1 : index
    %c0_22 = arith.constant 0 : index
    %c0_23 = arith.constant 0 : index
    %35 = vector.load %arg1[%c1, %c0_22, %c0_23] : memref<7x8x32xf32, #tpu.memory_space<vmem>>, vector<1x8x32xf32>
    %36 = vector.shape_cast %35 : vector<1x8x32xf32> to vector<8x32xf32>
    %cst_24 = arith.constant dense<0.000000e+00> : vector<8x32xf32>
    %37 = tpu.matmul %36, %0, %cst_24 {dimension_numbers = #tpu.dot_dimension_numbers<[1], [0], [0], [1], [0, 0, 1, 1], [], []>} : vector<8x32xf32>, vector<32x32xf32>, vector<8x32xf32> -> vector<8x32xf32>
    %38 = vector.broadcast %1 : vector<1x32xf32> to vector<8x32xf32>
    %39 = arith.addf %37, %38 : vector<8x32xf32>
    %cst_25 = arith.constant 5.000000e-01 : f32
    %40 = vector.broadcast %cst_25 : f32 to vector<8x32xf32>
    %41 = arith.mulf %40, %39 : vector<8x32xf32>
    %cst_26 = arith.constant 4.471500e-02 : f32
    %42 = vector.broadcast %cst_26 : f32 to vector<8x32xf32>
    %43 = arith.mulf %42, %39 : vector<8x32xf32>
    %44 = arith.mulf %43, %39 : vector<8x32xf32>
    %45 = arith.mulf %44, %39 : vector<8x32xf32>
    %46 = arith.addf %39, %45 : vector<8x32xf32>
    %cst_27 = arith.constant 0.797884583 : f32
    %47 = vector.broadcast %cst_27 : f32 to vector<8x32xf32>
    %48 = arith.mulf %47, %46 : vector<8x32xf32>
    %49 = math.tanh %48 : vector<8x32xf32>
    %cst_28 = arith.constant 1.000000e+00 : f32
    %50 = vector.broadcast %cst_28 : f32 to vector<8x32xf32>
    %51 = arith.addf %50, %49 : vector<8x32xf32>
    %52 = arith.mulf %41, %51 : vector<8x32xf32>
    %c1_29 = arith.constant 1 : index
    %c0_30 = arith.constant 0 : index
    %c0_31 = arith.constant 0 : index
    %53 = vector.load %arg6[%c1_29, %c0_30, %c0_31] : memref<7x8x32xf32, #tpu.memory_space<vmem>>, vector<1x8x32xf32>
    %54 = vector.shape_cast %53 : vector<1x8x32xf32> to vector<8x32xf32>
    %55 = vector.shape_cast %52 : vector<8x32xf32> to vector<1x8x32xf32>
    tpu.vector_store %arg6[%c1_29, %c0_30, %c0_31], %55 {strides = array<i32>} : memref<7x8x32xf32, #tpu.memory_space<vmem>>, vector<1x8x32xf32>,
    %c1_32 = arith.constant 1 : index
    %c0_33 = arith.constant 0 : index
    %c0_34 = arith.constant 0 : index
    %56 = vector.load %arg4[%c1_32, %c0_33, %c0_34] : memref<7x1x8xf32, #tpu.memory_space<vmem>>, vector<1x1x8xf32>
    %57 = vector.shape_cast %56 : vector<1x1x8xf32> to vector<1x8xf32>
    %cst_35 = arith.constant dense<0.000000e+00> : vector<1x32xf32>
    %58 = tpu.matmul %57, %52, %cst_35 {dimension_numbers = #tpu.dot_dimension_numbers<[1], [0], [0], [1], [0, 0, 1, 1], [], []>} : vector<1x8xf32>, vector<8x32xf32>, vector<1x32xf32> -> vector<1x32xf32>
    %cst_36 = arith.constant dense<0.000000e+00> : vector<1xf32>
    %59 = vector.multi_reduction <add>, %57, %cst_36 [1] : vector<1x8xf32> to vector<1xf32>
    %60 = vector.shape_cast %59 : vector<1xf32> to vector<1x1xf32>
    %cst_37 = arith.constant 1.000000e+00 : f32
    %61 = vector.broadcast %cst_37 : f32 to vector<1x1xf32>
    %62 = arith.maximumf %60, %61 : vector<1x1xf32>
    %63 = vector.broadcast %62 : vector<1x1xf32> to vector<1x32xf32>
    %64 = arith.divf %58, %63 : vector<1x32xf32>
    %c1_38 = arith.constant 1 : index
    %c0_39 = arith.constant 0 : index
    %c0_40 = arith.constant 0 : index
    %65 = vector.load %arg5[%c1_38, %c0_39, %c0_40] : memref<7x1x32xf32, #tpu.memory_space<vmem>>, vector<1x1x32xf32>
    %66 = vector.shape_cast %65 : vector<1x1x32xf32> to vector<1x32xf32>
    %67 = vector.shape_cast %64 : vector<1x32xf32> to vector<1x1x32xf32>
    tpu.vector_store %arg5[%c1_38, %c0_39, %c0_40], %67 {strides = array<i32>} : memref<7x1x32xf32, #tpu.memory_space<vmem>>, vector<1x1x32xf32>,
    %c2 = arith.constant 2 : index
    %c0_41 = arith.constant 0 : index
    %c0_42 = arith.constant 0 : index
    %68 = vector.load %arg1[%c2, %c0_41, %c0_42] : memref<7x8x32xf32, #tpu.memory_space<vmem>>, vector<1x8x32xf32>
    %69 = vector.shape_cast %68 : vector<1x8x32xf32> to vector<8x32xf32>
    %cst_43 = arith.constant dense<0.000000e+00> : vector<8x32xf32>
    %70 = tpu.matmul %69, %0, %cst_43 {dimension_numbers = #tpu.dot_dimension_numbers<[1], [0], [0], [1], [0, 0, 1, 1], [], []>} : vector<8x32xf32>, vector<32x32xf32>, vector<8x32xf32> -> vector<8x32xf32>
    %71 = vector.broadcast %1 : vector<1x32xf32> to vector<8x32xf32>
    %72 = arith.addf %70, %71 : vector<8x32xf32>
    %cst_44 = arith.constant 5.000000e-01 : f32
    %73 = vector.broadcast %cst_44 : f32 to vector<8x32xf32>
    %74 = arith.mulf %73, %72 : vector<8x32xf32>
    %cst_45 = arith.constant 4.471500e-02 : f32
    %75 = vector.broadcast %cst_45 : f32 to vector<8x32xf32>
    %76 = arith.mulf %75, %72 : vector<8x32xf32>
    %77 = arith.mulf %76, %72 : vector<8x32xf32>
    %78 = arith.mulf %77, %72 : vector<8x32xf32>
    %79 = arith.addf %72, %78 : vector<8x32xf32>
    %cst_46 = arith.constant 0.797884583 : f32
    %80 = vector.broadcast %cst_46 : f32 to vector<8x32xf32>
    %81 = arith.mulf %80, %79 : vector<8x32xf32>
    %82 = math.tanh %81 : vector<8x32xf32>
    %cst_47 = arith.constant 1.000000e+00 : f32
    %83 = vector.broadcast %cst_47 : f32 to vector<8x32xf32>
    %84 = arith.addf %83, %82 : vector<8x32xf32>
    %85 = arith.mulf %74, %84 : vector<8x32xf32>
    %c2_48 = arith.constant 2 : index
    %c0_49 = arith.constant 0 : index
    %c0_50 = arith.constant 0 : index
    %86 = vector.load %arg6[%c2_48, %c0_49, %c0_50] : memref<7x8x32xf32, #tpu.memory_space<vmem>>, vector<1x8x32xf32>
    %87 = vector.shape_cast %86 : vector<1x8x32xf32> to vector<8x32xf32>
    %88 = vector.shape_cast %85 : vector<8x32xf32> to vector<1x8x32xf32>
    tpu.vector_store %arg6[%c2_48, %c0_49, %c0_50], %88 {strides = array<i32>} : memref<7x8x32xf32, #tpu.memory_space<vmem>>, vector<1x8x32xf32>,
    %c2_51 = arith.constant 2 : index
    %c0_52 = arith.constant 0 : index
    %c0_53 = arith.constant 0 : index
    %89 = vector.load %arg4[%c2_51, %c0_52, %c0_53] : memref<7x1x8xf32, #tpu.memory_space<vmem>>, vector<1x1x8xf32>
    %90 = vector.shape_cast %89 : vector<1x1x8xf32> to vector<1x8xf32>
    %cst_54 = arith.constant dense<0.000000e+00> : vector<1x32xf32>
    %91 = tpu.matmul %90, %85, %cst_54 {dimension_numbers = #tpu.dot_dimension_numbers<[1], [0], [0], [1], [0, 0, 1, 1], [], []>} : vector<1x8xf32>, vector<8x32xf32>, vector<1x32xf32> -> vector<1x32xf32>
    %cst_55 = arith.constant dense<0.000000e+00> : vector<1xf32>
    %92 = vector.multi_reduction <add>, %90, %cst_55 [1] : vector<1x8xf32> to vector<1xf32>
    %93 = vector.shape_cast %92 : vector<1xf32> to vector<1x1xf32>
    %cst_56 = arith.constant 1.000000e+00 : f32
    %94 = vector.broadcast %cst_56 : f32 to vector<1x1xf32>
    %95 = arith.maximumf %93, %94 : vector<1x1xf32>
    %96 = vector.broadcast %95 : vector<1x1xf32> to vector<1x32xf32>
    %97 = arith.divf %91, %96 : vector<1x32xf32>
    %c2_57 = arith.constant 2 : index
    %c0_58 = arith.constant 0 : index
    %c0_59 = arith.constant 0 : index
    %98 = vector.load %arg5[%c2_57, %c0_58, %c0_59] : memref<7x1x32xf32, #tpu.memory_space<vmem>>, vector<1x1x32xf32>
    %99 = vector.shape_cast %98 : vector<1x1x32xf32> to vector<1x32xf32>
    %100 = vector.shape_cast %97 : vector<1x32xf32> to vector<1x1x32xf32>
    tpu.vector_store %arg5[%c2_57, %c0_58, %c0_59], %100 {strides = array<i32>} : memref<7x1x32xf32, #tpu.memory_space<vmem>>, vector<1x1x32xf32>,
    %c3 = arith.constant 3 : index
    %c0_60 = arith.constant 0 : index
    %c0_61 = arith.constant 0 : index
    %101 = vector.load %arg1[%c3, %c0_60, %c0_61] : memref<7x8x32xf32, #tpu.memory_space<vmem>>, vector<1x8x32xf32>
    %102 = vector.shape_cast %101 : vector<1x8x32xf32> to vector<8x32xf32>
    %cst_62 = arith.constant dense<0.000000e+00> : vector<8x32xf32>
    %103 = tpu.matmul %102, %0, %cst_62 {dimension_numbers = #tpu.dot_dimension_numbers<[1], [0], [0], [1], [0, 0, 1, 1], [], []>} : vector<8x32xf32>, vector<32x32xf32>, vector<8x32xf32> -> vector<8x32xf32>
    %104 = vector.broadcast %1 : vector<1x32xf32> to vector<8x32xf32>
    %105 = arith.addf %103, %104 : vector<8x32xf32>
    %cst_63 = arith.constant 5.000000e-01 : f32
    %106 = vector.broadcast %cst_63 : f32 to vector<8x32xf32>
    %107 = arith.mulf %106, %105 : vector<8x32xf32>
    %cst_64 = arith.constant 4.471500e-02 : f32
    %108 = vector.broadcast %cst_64 : f32 to vector<8x32xf32>
    %109 = arith.mulf %108, %105 : vector<8x32xf32>
    %110 = arith.mulf %109, %105 : vector<8x32xf32>
    %111 = arith.mulf %110, %105 : vector<8x32xf32>
    %112 = arith.addf %105, %111 : vector<8x32xf32>
    %cst_65 = arith.constant 0.797884583 : f32
    %113 = vector.broadcast %cst_65 : f32 to vector<8x32xf32>
    %114 = arith.mulf %113, %112 : vector<8x32xf32>
    %115 = math.tanh %114 : vector<8x32xf32>
    %cst_66 = arith.constant 1.000000e+00 : f32
    %116 = vector.broadcast %cst_66 : f32 to vector<8x32xf32>
    %117 = arith.addf %116, %115 : vector<8x32xf32>
    %118 = arith.mulf %107, %117 : vector<8x32xf32>
    %c3_67 = arith.constant 3 : index
    %c0_68 = arith.constant 0 : index
    %c0_69 = arith.constant 0 : index
    %119 = vector.load %arg6[%c3_67, %c0_68, %c0_69] : memref<7x8x32xf32, #tpu.memory_space<vmem>>, vector<1x8x32xf32>
    %120 = vector.shape_cast %119 : vector<1x8x32xf32> to vector<8x32xf32>
    %121 = vector.shape_cast %118 : vector<8x32xf32> to vector<1x8x32xf32>
    tpu.vector_store %arg6[%c3_67, %c0_68, %c0_69], %121 {strides = array<i32>} : memref<7x8x32xf32, #tpu.memory_space<vmem>>, vector<1x8x32xf32>,
    %c3_70 = arith.constant 3 : index
    %c0_71 = arith.constant 0 : index
    %c0_72 = arith.constant 0 : index
    %122 = vector.load %arg4[%c3_70, %c0_71, %c0_72] : memref<7x1x8xf32, #tpu.memory_space<vmem>>, vector<1x1x8xf32>
    %123 = vector.shape_cast %122 : vector<1x1x8xf32> to vector<1x8xf32>
    %cst_73 = arith.constant dense<0.000000e+00> : vector<1x32xf32>
    %124 = tpu.matmul %123, %118, %cst_73 {dimension_numbers = #tpu.dot_dimension_numbers<[1], [0], [0], [1], [0, 0, 1, 1], [], []>} : vector<1x8xf32>, vector<8x32xf32>, vector<1x32xf32> -> vector<1x32xf32>
    %cst_74 = arith.constant dense<0.000000e+00> : vector<1xf32>
    %125 = vector.multi_reduction <add>, %123, %cst_74 [1] : vector<1x8xf32> to vector<1xf32>
    %126 = vector.shape_cast %125 : vector<1xf32> to vector<1x1xf32>
    %cst_75 = arith.constant 1.000000e+00 : f32
    %127 = vector.broadcast %cst_75 : f32 to vector<1x1xf32>
    %128 = arith.maximumf %126, %127 : vector<1x1xf32>
    %129 = vector.broadcast %128 : vector<1x1xf32> to vector<1x32xf32>
    %130 = arith.divf %124, %129 : vector<1x32xf32>
    %c3_76 = arith.constant 3 : index
    %c0_77 = arith.constant 0 : index
    %c0_78 = arith.constant 0 : index
    %131 = vector.load %arg5[%c3_76, %c0_77, %c0_78] : memref<7x1x32xf32, #tpu.memory_space<vmem>>, vector<1x1x32xf32>
    %132 = vector.shape_cast %131 : vector<1x1x32xf32> to vector<1x32xf32>
    %133 = vector.shape_cast %130 : vector<1x32xf32> to vector<1x1x32xf32>
    tpu.vector_store %arg5[%c3_76, %c0_77, %c0_78], %133 {strides = array<i32>} : memref<7x1x32xf32, #tpu.memory_space<vmem>>, vector<1x1x32xf32>,
    %c4 = arith.constant 4 : index
    %c0_79 = arith.constant 0 : index
    %c0_80 = arith.constant 0 : index
    %134 = vector.load %arg1[%c4, %c0_79, %c0_80] : memref<7x8x32xf32, #tpu.memory_space<vmem>>, vector<1x8x32xf32>
    %135 = vector.shape_cast %134 : vector<1x8x32xf32> to vector<8x32xf32>
    %cst_81 = arith.constant dense<0.000000e+00> : vector<8x32xf32>
    %136 = tpu.matmul %135, %0, %cst_81 {dimension_numbers = #tpu.dot_dimension_numbers<[1], [0], [0], [1], [0, 0, 1, 1], [], []>} : vector<8x32xf32>, vector<32x32xf32>, vector<8x32xf32> -> vector<8x32xf32>
    %137 = vector.broadcast %1 : vector<1x32xf32> to vector<8x32xf32>
    %138 = arith.addf %136, %137 : vector<8x32xf32>
    %cst_82 = arith.constant 5.000000e-01 : f32
    %139 = vector.broadcast %cst_82 : f32 to vector<8x32xf32>
    %140 = arith.mulf %139, %138 : vector<8x32xf32>
    %cst_83 = arith.constant 4.471500e-02 : f32
    %141 = vector.broadcast %cst_83 : f32 to vector<8x32xf32>
    %142 = arith.mulf %141, %138 : vector<8x32xf32>
    %143 = arith.mulf %142, %138 : vector<8x32xf32>
    %144 = arith.mulf %143, %138 : vector<8x32xf32>
    %145 = arith.addf %138, %144 : vector<8x32xf32>
    %cst_84 = arith.constant 0.797884583 : f32
    %146 = vector.broadcast %cst_84 : f32 to vector<8x32xf32>
    %147 = arith.mulf %146, %145 : vector<8x32xf32>
    %148 = math.tanh %147 : vector<8x32xf32>
    %cst_85 = arith.constant 1.000000e+00 : f32
    %149 = vector.broadcast %cst_85 : f32 to vector<8x32xf32>
    %150 = arith.addf %149, %148 : vector<8x32xf32>
    %151 = arith.mulf %140, %150 : vector<8x32xf32>
    %c4_86 = arith.constant 4 : index
    %c0_87 = arith.constant 0 : index
    %c0_88 = arith.constant 0 : index
    %152 = vector.load %arg6[%c4_86, %c0_87, %c0_88] : memref<7x8x32xf32, #tpu.memory_space<vmem>>, vector<1x8x32xf32>
    %153 = vector.shape_cast %152 : vector<1x8x32xf32> to vector<8x32xf32>
    %154 = vector.shape_cast %151 : vector<8x32xf32> to vector<1x8x32xf32>
    tpu.vector_store %arg6[%c4_86, %c0_87, %c0_88], %154 {strides = array<i32>} : memref<7x8x32xf32, #tpu.memory_space<vmem>>, vector<1x8x32xf32>,
    %c4_89 = arith.constant 4 : index
    %c0_90 = arith.constant 0 : index
    %c0_91 = arith.constant 0 : index
    %155 = vector.load %arg4[%c4_89, %c0_90, %c0_91] : memref<7x1x8xf32, #tpu.memory_space<vmem>>, vector<1x1x8xf32>
    %156 = vector.shape_cast %155 : vector<1x1x8xf32> to vector<1x8xf32>
    %cst_92 = arith.constant dense<0.000000e+00> : vector<1x32xf32>
    %157 = tpu.matmul %156, %151, %cst_92 {dimension_numbers = #tpu.dot_dimension_numbers<[1], [0], [0], [1], [0, 0, 1, 1], [], []>} : vector<1x8xf32>, vector<8x32xf32>, vector<1x32xf32> -> vector<1x32xf32>
    %cst_93 = arith.constant dense<0.000000e+00> : vector<1xf32>
    %158 = vector.multi_reduction <add>, %156, %cst_93 [1] : vector<1x8xf32> to vector<1xf32>
    %159 = vector.shape_cast %158 : vector<1xf32> to vector<1x1xf32>
    %cst_94 = arith.constant 1.000000e+00 : f32
    %160 = vector.broadcast %cst_94 : f32 to vector<1x1xf32>
    %161 = arith.maximumf %159, %160 : vector<1x1xf32>
    %162 = vector.broadcast %161 : vector<1x1xf32> to vector<1x32xf32>
    %163 = arith.divf %157, %162 : vector<1x32xf32>
    %c4_95 = arith.constant 4 : index
    %c0_96 = arith.constant 0 : index
    %c0_97 = arith.constant 0 : index
    %164 = vector.load %arg5[%c4_95, %c0_96, %c0_97] : memref<7x1x32xf32, #tpu.memory_space<vmem>>, vector<1x1x32xf32>
    %165 = vector.shape_cast %164 : vector<1x1x32xf32> to vector<1x32xf32>
    %166 = vector.shape_cast %163 : vector<1x32xf32> to vector<1x1x32xf32>
    tpu.vector_store %arg5[%c4_95, %c0_96, %c0_97], %166 {strides = array<i32>} : memref<7x1x32xf32, #tpu.memory_space<vmem>>, vector<1x1x32xf32>,
    %c5 = arith.constant 5 : index
    %c0_98 = arith.constant 0 : index
    %c0_99 = arith.constant 0 : index
    %167 = vector.load %arg1[%c5, %c0_98, %c0_99] : memref<7x8x32xf32, #tpu.memory_space<vmem>>, vector<1x8x32xf32>
    %168 = vector.shape_cast %167 : vector<1x8x32xf32> to vector<8x32xf32>
    %cst_100 = arith.constant dense<0.000000e+00> : vector<8x32xf32>
    %169 = tpu.matmul %168, %0, %cst_100 {dimension_numbers = #tpu.dot_dimension_numbers<[1], [0], [0], [1], [0, 0, 1, 1], [], []>} : vector<8x32xf32>, vector<32x32xf32>, vector<8x32xf32> -> vector<8x32xf32>
    %170 = vector.broadcast %1 : vector<1x32xf32> to vector<8x32xf32>
    %171 = arith.addf %169, %170 : vector<8x32xf32>
    %cst_101 = arith.constant 5.000000e-01 : f32
    %172 = vector.broadcast %cst_101 : f32 to vector<8x32xf32>
    %173 = arith.mulf %172, %171 : vector<8x32xf32>
    %cst_102 = arith.constant 4.471500e-02 : f32
    %174 = vector.broadcast %cst_102 : f32 to vector<8x32xf32>
    %175 = arith.mulf %174, %171 : vector<8x32xf32>
    %176 = arith.mulf %175, %171 : vector<8x32xf32>
    %177 = arith.mulf %176, %171 : vector<8x32xf32>
    %178 = arith.addf %171, %177 : vector<8x32xf32>
    %cst_103 = arith.constant 0.797884583 : f32
    %179 = vector.broadcast %cst_103 : f32 to vector<8x32xf32>
    %180 = arith.mulf %179, %178 : vector<8x32xf32>
    %181 = math.tanh %180 : vector<8x32xf32>
    %cst_104 = arith.constant 1.000000e+00 : f32
    %182 = vector.broadcast %cst_104 : f32 to vector<8x32xf32>
    %183 = arith.addf %182, %181 : vector<8x32xf32>
    %184 = arith.mulf %173, %183 : vector<8x32xf32>
    %c5_105 = arith.constant 5 : index
    %c0_106 = arith.constant 0 : index
    %c0_107 = arith.constant 0 : index
    %185 = vector.load %arg6[%c5_105, %c0_106, %c0_107] : memref<7x8x32xf32, #tpu.memory_space<vmem>>, vector<1x8x32xf32>
    %186 = vector.shape_cast %185 : vector<1x8x32xf32> to vector<8x32xf32>
    %187 = vector.shape_cast %184 : vector<8x32xf32> to vector<1x8x32xf32>
    tpu.vector_store %arg6[%c5_105, %c0_106, %c0_107], %187 {strides = array<i32>} : memref<7x8x32xf32, #tpu.memory_space<vmem>>, vector<1x8x32xf32>,
    %c5_108 = arith.constant 5 : index
    %c0_109 = arith.constant 0 : index
    %c0_110 = arith.constant 0 : index
    %188 = vector.load %arg4[%c5_108, %c0_109, %c0_110] : memref<7x1x8xf32, #tpu.memory_space<vmem>>, vector<1x1x8xf32>
    %189 = vector.shape_cast %188 : vector<1x1x8xf32> to vector<1x8xf32>
    %cst_111 = arith.constant dense<0.000000e+00> : vector<1x32xf32>
    %190 = tpu.matmul %189, %184, %cst_111 {dimension_numbers = #tpu.dot_dimension_numbers<[1], [0], [0], [1], [0, 0, 1, 1], [], []>} : vector<1x8xf32>, vector<8x32xf32>, vector<1x32xf32> -> vector<1x32xf32>
    %cst_112 = arith.constant dense<0.000000e+00> : vector<1xf32>
    %191 = vector.multi_reduction <add>, %189, %cst_112 [1] : vector<1x8xf32> to vector<1xf32>
    %192 = vector.shape_cast %191 : vector<1xf32> to vector<1x1xf32>
    %cst_113 = arith.constant 1.000000e+00 : f32
    %193 = vector.broadcast %cst_113 : f32 to vector<1x1xf32>
    %194 = arith.maximumf %192, %193 : vector<1x1xf32>
    %195 = vector.broadcast %194 : vector<1x1xf32> to vector<1x32xf32>
    %196 = arith.divf %190, %195 : vector<1x32xf32>
    %c5_114 = arith.constant 5 : index
    %c0_115 = arith.constant 0 : index
    %c0_116 = arith.constant 0 : index
    %197 = vector.load %arg5[%c5_114, %c0_115, %c0_116] : memref<7x1x32xf32, #tpu.memory_space<vmem>>, vector<1x1x32xf32>
    %198 = vector.shape_cast %197 : vector<1x1x32xf32> to vector<1x32xf32>
    %199 = vector.shape_cast %196 : vector<1x32xf32> to vector<1x1x32xf32>
    tpu.vector_store %arg5[%c5_114, %c0_115, %c0_116], %199 {strides = array<i32>} : memref<7x1x32xf32, #tpu.memory_space<vmem>>, vector<1x1x32xf32>,
    %c6 = arith.constant 6 : index
    %c0_117 = arith.constant 0 : index
    %c0_118 = arith.constant 0 : index
    %200 = vector.load %arg1[%c6, %c0_117, %c0_118] : memref<7x8x32xf32, #tpu.memory_space<vmem>>, vector<1x8x32xf32>
    %201 = vector.shape_cast %200 : vector<1x8x32xf32> to vector<8x32xf32>
    %cst_119 = arith.constant dense<0.000000e+00> : vector<8x32xf32>
    %202 = tpu.matmul %201, %0, %cst_119 {dimension_numbers = #tpu.dot_dimension_numbers<[1], [0], [0], [1], [0, 0, 1, 1], [], []>} : vector<8x32xf32>, vector<32x32xf32>, vector<8x32xf32> -> vector<8x32xf32>
    %203 = vector.broadcast %1 : vector<1x32xf32> to vector<8x32xf32>
    %204 = arith.addf %202, %203 : vector<8x32xf32>
    %cst_120 = arith.constant 5.000000e-01 : f32
    %205 = vector.broadcast %cst_120 : f32 to vector<8x32xf32>
    %206 = arith.mulf %205, %204 : vector<8x32xf32>
    %cst_121 = arith.constant 4.471500e-02 : f32
    %207 = vector.broadcast %cst_121 : f32 to vector<8x32xf32>
    %208 = arith.mulf %207, %204 : vector<8x32xf32>
    %209 = arith.mulf %208, %204 : vector<8x32xf32>
    %210 = arith.mulf %209, %204 : vector<8x32xf32>
    %211 = arith.addf %204, %210 : vector<8x32xf32>
    %cst_122 = arith.constant 0.797884583 : f32
    %212 = vector.broadcast %cst_122 : f32 to vector<8x32xf32>
    %213 = arith.mulf %212, %211 : vector<8x32xf32>
    %214 = math.tanh %213 : vector<8x32xf32>
    %cst_123 = arith.constant 1.000000e+00 : f32
    %215 = vector.broadcast %cst_123 : f32 to vector<8x32xf32>
    %216 = arith.addf %215, %214 : vector<8x32xf32>
    %217 = arith.mulf %206, %216 : vector<8x32xf32>
    %c6_124 = arith.constant 6 : index
    %c0_125 = arith.constant 0 : index
    %c0_126 = arith.constant 0 : index
    %218 = vector.load %arg6[%c6_124, %c0_125, %c0_126] : memref<7x8x32xf32, #tpu.memory_space<vmem>>, vector<1x8x32xf32>
    %219 = vector.shape_cast %218 : vector<1x8x32xf32> to vector<8x32xf32>
    %220 = vector.shape_cast %217 : vector<8x32xf32> to vector<1x8x32xf32>
    tpu.vector_store %arg6[%c6_124, %c0_125, %c0_126], %220 {strides = array<i32>} : memref<7x8x32xf32, #tpu.memory_space<vmem>>, vector<1x8x32xf32>,
    %c6_127 = arith.constant 6 : index
    %c0_128 = arith.constant 0 : index
    %c0_129 = arith.constant 0 : index
    %221 = vector.load %arg4[%c6_127, %c0_128, %c0_129] : memref<7x1x8xf32, #tpu.memory_space<vmem>>, vector<1x1x8xf32>
    %222 = vector.shape_cast %221 : vector<1x1x8xf32> to vector<1x8xf32>
    %cst_130 = arith.constant dense<0.000000e+00> : vector<1x32xf32>
    %223 = tpu.matmul %222, %217, %cst_130 {dimension_numbers = #tpu.dot_dimension_numbers<[1], [0], [0], [1], [0, 0, 1, 1], [], []>} : vector<1x8xf32>, vector<8x32xf32>, vector<1x32xf32> -> vector<1x32xf32>
    %cst_131 = arith.constant dense<0.000000e+00> : vector<1xf32>
    %224 = vector.multi_reduction <add>, %222, %cst_131 [1] : vector<1x8xf32> to vector<1xf32>
    %225 = vector.shape_cast %224 : vector<1xf32> to vector<1x1xf32>
    %cst_132 = arith.constant 1.000000e+00 : f32
    %226 = vector.broadcast %cst_132 : f32 to vector<1x1xf32>
    %227 = arith.maximumf %225, %226 : vector<1x1xf32>
    %228 = vector.broadcast %227 : vector<1x1xf32> to vector<1x32xf32>
    %229 = arith.divf %223, %228 : vector<1x32xf32>
    %c6_133 = arith.constant 6 : index
    %c0_134 = arith.constant 0 : index
    %c0_135 = arith.constant 0 : index
    %230 = vector.load %arg5[%c6_133, %c0_134, %c0_135] : memref<7x1x32xf32, #tpu.memory_space<vmem>>, vector<1x1x32xf32>
    %231 = vector.shape_cast %230 : vector<1x1x32xf32> to vector<1x32xf32>
    %232 = vector.shape_cast %229 : vector<1x32xf32> to vector<1x1x32xf32>
    tpu.vector_store %arg5[%c6_133, %c0_134, %c0_135], %232 {strides = array<i32>} : memref<7x1x32xf32, #tpu.memory_space<vmem>>, vector<1x1x32xf32>,
    return
  }
  func.func @transform_0(%arg0: i32) -> (i32, i32, i32) {
    %c0_i32 = arith.constant 0 : i32
    %c0_i32_0 = arith.constant 0 : i32
    %c0_i32_1 = arith.constant 0 : i32
    %c0_i32_2 = arith.constant 0 : i32
    return %c0_i32, %c0_i32_0, %c0_i32_1 : i32, i32, i32
  }
  func.func @transform_1(%arg0: i32) -> (i32, i32) {
    %c0_i32 = arith.constant 0 : i32
    %c0_i32_0 = arith.constant 0 : i32
    %c0_i32_1 = arith.constant 0 : i32
    return %c0_i32, %c0_i32_0 : i32, i32
  }
  func.func @transform_2(%arg0: i32) -> (i32, i32) {
    %c0_i32 = arith.constant 0 : i32
    %c0_i32_0 = arith.constant 0 : i32
    %c0_i32_1 = arith.constant 0 : i32
    return %c0_i32, %c0_i32_0 : i32, i32
  }
  func.func @transform_3(%arg0: i32) -> (i32, i32, i32) {
    %c0_i32 = arith.constant 0 : i32
    %c0_i32_0 = arith.constant 0 : i32
    %c0_i32_1 = arith.constant 0 : i32
    %c0_i32_2 = arith.constant 0 : i32
    return %c0_i32, %c0_i32_0, %c0_i32_1 : i32, i32, i32
  }
  func.func @transform_4(%arg0: i32) -> (i32, i32, i32) {
    %c0_i32 = arith.constant 0 : i32
    %c0_i32_0 = arith.constant 0 : i32
    %c0_i32_1 = arith.constant 0 : i32
    %c0_i32_2 = arith.constant 0 : i32
    return %c0_i32, %c0_i32_0, %c0_i32_1 : i32, i32, i32
  }
  func.func @transform_5(%arg0: i32) -> (i32, i32, i32) {
    %c0_i32 = arith.constant 0 : i32
    %c0_i32_0 = arith.constant 0 : i32
    %c0_i32_1 = arith.constant 0 : i32
    %c0_i32_2 = arith.constant 0 : i32
    return %c0_i32, %c0_i32_0, %c0_i32_1 : i32, i32, i32
  }
}

</mosaic_0001>

<bundles_post_ra>
// kernel: tpu_custom_call.1
= control target key start
LH: loop header
LB: loop body
LE: loop exit
PB: predicated region body
PF: predicated region fallthrough
CT: control target
= control target key end

     0   :  { %11 = vsyncpa [#allocation3], 0  ;;  %s1830_s0 = inlined_call_operand.hbm [shape: f32[7,8,32], index: 0, kind: input, shape index: {}]   ;;  %s1831_s1 = inlined_call_operand.hbm [shape: f32[32,32], index: 1, kind: input, shape index: {}]   ;;  %s1832_s2 = inlined_call_operand.vmem [shape: f32[1,32], index: 2, kind: input, shape index: {}]   ;;  %s1833_s3 = inlined_call_operand.hbm [shape: f32[7,1,8], index: 3, kind: input, shape index: {}]   ;;  %s1834_s4 = inlined_call_operand.hbm [shape: f32[7,1,32], index: 4, kind: output, shape index: {0}]   ;;  %s1835_s5 = inlined_call_operand.hbm [shape: f32[7,8,32], index: 5, kind: output, shape index: {1}]  }
   0x1   :  { %12 = vsyncpa [#allocation6], 0 }
   0x2   :  { %13 = vsyncpa [#allocation4], 0 }
   0x3   :  { %14 = vsyncpa [#allocation10], 0  ;;  %s1613_s18 = smov [#allocation5]   ;;  %s1614_s20 = smov [#allocation2]  }
   0x4   :  { %s32_s19 = sshll.u32 %s1613_s18, 4  ;;  %s20_s21 = sshll.u32 %s1614_s20, 4  ;;  %s33_s19 = int_to_ptr.vmem [resolvable:$true] %s32_s19  ;;  %s21_s21 = int_to_ptr.vmem [resolvable:$true] %s20_s21 }
   0x5   :  { %s1513_s22 = scalar_lea.vmem %s33_s19, 512  ;;  %p1518_p1 = scmp.lt.s32.totalorder %s33_s19, %s33_s19 }
   0x6   :  { %p1514_p0 = scmp.ne.s32.totalorder %s33_s19, %s1513_s22  ;;  %p1519_p2 = scmp.lt.s32.totalorder %s1513_s22, %s1513_s22 }
   0x8   :  { %p1520_p3 = por %p1519_p2, %p1518_p1 }
   0xa   :  { %p1521_p4 = pnand %p1520_p3, %p1514_p0 }
   0xc   :  { %1524 = shalt.err (!%p1521_p4)
}
   0xd   :  { %s1615_s23 = smov 128   ;;  %s1616_s24 = smov 8  }
   0xe   :  { %38 = dma.hbm_to_vmem [thread:$0]  %s1831_s1, 512, %s33_s19, [#allocation6], %s1615_s23, %s1615_s23, %s1616_s24  }
   0xf   :  { %s1533_s27 = scalar_lea.vmem %s21_s21, 896  ;;  %p1538_p6 = scmp.lt.s32.totalorder %s21_s21, %s21_s21 }
  0x10   :  { %p1534_p5 = scmp.ne.s32.totalorder %s21_s21, %s1533_s27  ;;  %p1539_p7 = scmp.lt.s32.totalorder %s1533_s27, %s1533_s27 }
  0x12   :  { %p1540_p8 = por %p1539_p7, %p1538_p6 }
  0x14   :  { %p1541_p9 = pnand %p1540_p8, %p1534_p5 }
  0x16   :  { %1544 = shalt.err (!%p1541_p9)
}
  0x17   :  { %26 = dma.hbm_to_vmem [thread:$0]  %s1830_s0, 896, %s21_s21, [#allocation3], %s1615_s23, %s1615_s23, %s1616_s24  }
  0x18   :  { %s1617_s30 = smov [#allocation7]  }
  0x19   :  { %s46_s6 = sshll.u32 %s1617_s30, 4  ;;  %s47_s6 = int_to_ptr.vmem [resolvable:$true] %s46_s6 }
  0x1a   :  { %s1553_s7 = scalar_lea.vmem %s47_s6, 112  ;;  %s1557_s1 = scalar_lea.vmem %s47_s6, 128 }
  0x1b   :  { %p1554_p10 = scmp.ne.s32.totalorder %s47_s6, %s1553_s7  ;;  %p1558_p11 = scmp.lt.s32.totalorder %s47_s6, %s47_s6 }
  0x1c   :  { %p1559_p12 = scmp.lt.s32.totalorder %s1557_s1, %s1553_s7 }
  0x1e   :  { %p1560_p13 = por %p1559_p12, %p1558_p11 }
  0x20   :  { %p1561_p0 = pnand %p1560_p13, %p1554_p10 }
  0x22   :  { %1564 = shalt.err (!%p1561_p0)
}
  0x23   :  { %s1618_s8 = smov 16   ;;  %s1619_s9 = smov 1  }
  0x24   :  { %52 = dma.hbm_to_vmem [thread:$0]  %s1833_s3, 112, %s47_s6, [#allocation6], %s1618_s8, %s1618_s8, %s1619_s9  }
  0x25   :  { %1605 = dma.done.wait [#allocation3], 896  }
  0x26   :  { %1606 = vsyncadd [#allocation3], 4294966400 }
  0x27   :  { %1607 = dma.done.wait [#allocation6], 624  }
  0x28   :  { %1608 = vsyncadd [#allocation6], 4294966672  ;;  %v1620_v0 = vmov 0.0   ;;  %vm1621_vm0 = vmmov 0   ;;  %v1678_v1 = vld [vmem:[#allocation5 + $0x18] sm:$0xff]  ;;  %v1680_v2 = vld [vmem:[#allocation5 + $0x10] sm:$0xff] }
  0x29   :  { %1354 = vmatprep.subr.mxu0 %v1620_v0  ;;  %1362 = vmatprep.mubr.msk.f32.mxu0 %vm1621_vm0, %v1620_v0  ;;  %v1684_v3 = vld [vmem:[#allocation5 + $0x8] sm:$0xff]  ;;  %v1688_v4 = vld [vmem:[#allocation5] sm:$0xff]  ;;  %vm74_vm1 = vcmask 261120   ;;  %vm233_vm2 = vcmask 57344   ;;  %vm159_vm3 = vcmask 64512   ;;  %v243_v21 = vld [vmem:[#allocation2 + $0x8] sm:$0xff] }
  0x2a   :  { %1365 = vmatprep.subr.mxu1 %v1620_v0  ;;  %1367 = vmatprep.mubr.msk.f32.mxu1 %vm1621_vm0, %v1620_v0  ;;  %v67_v5 = vld [vmem:[#allocation2] sm:$0xff]  ;;  %v158_v6 = vld [vmem:[#allocation7] sm:$0x1]  ;;  %v412_v22 = vld [vmem:[#allocation2 + $0x10] sm:$0xff]  ;;  %vm240_vm4 = vcmask 253952  }
  0x2b   :  { %1355 = vmatpush3.msra.mxu0 %v1678_v1  ;;  %v234_v7 = vsel %vm233_vm2, %v158_v6, 0.0  ;;  %v1701_v8 = vld [vmem:[%s1832_s2] ss:$0 sm:$0xff]  ;;  %v329_v23 = vld [vmem:[#allocation7 + $0x1] sm:$0x1]  ;;  %s1622_s2 = smov [#allocation9]  }
  0x2c   :  { %1356 = vmatprep.subr.mxu0 %v1620_v0  ;;  %235 = vadd.xlane.f32.xlu0 %v234_v7  ;;  %v498_v24 = vld [vmem:[#allocation7 + $0x2] sm:$0x1]  ;;  %v403_v25 = vsel %vm233_vm2, %v329_v23, 0.0  ;;  %v667_v58 = vld [vmem:[#allocation7 + $0x3] sm:$0x1]  ;;  %s1273_s12 = sshll.u32 %s1622_s2, 4  ;;  %s1274_s12 = int_to_ptr.vmem [resolvable:$true] %s1273_s12 }
  0x2d   :  { %1357 = vmatpush3.msra.mxu0 %v1680_v2  ;;  %v572_v26 = vsel %vm233_vm2, %v498_v24, 0.0  ;;  %v581_v57 = vld [vmem:[#allocation2 + $0x18] sm:$0xff]  ;;  %v741_v59 = vsel %vm233_vm2, %v667_v58, 0.0  ;;  %s1565_s13 = scalar_lea.vmem %s1274_s12, 896  ;;  %p1570_p2 = scmp.lt.s32.totalorder %s1274_s12, %s1274_s12 }
  0x2e   :  { %1358 = vmatprep.subr.mxu0 %v1620_v0  ;;  %573 = vadd.xlane.f32.xlu1 %v572_v26  ;;  %v750_v26 = vld [vmem:[#allocation2 + $0x20] sm:$0xff]  ;;  %p1566_p1 = scmp.ne.s32.totalorder %s1274_s12, %s1565_s13  ;;  %p1571_p3 = scmp.lt.s32.totalorder %s1565_s13, %s1565_s13 }
  0x2f   :  { %1359 = vmatpush3.msra.mxu0 %v1684_v3 }
  0x30   :  { %1360 = vmatprep.subr.mxu0 %v1620_v0  ;;  %404 = vadd.xlane.f32.xlu0 %v403_v25  ;;  %p1572_p4 = por %p1571_p3, %p1570_p2 }
  0x31   :  { %1361 = vmatpush3.msra.mxu0 %v1688_v4 }
  0x32   :  { %1363 = vmatmul.mubr.msk.f32.vlgmr.msra.gmra.mxu0 %vm74_vm1, %v67_v5  ;;  %1381 = vmatprep.subr.mxu0 %v1620_v0  ;;  %p1573_p5 = pnand %p1572_p4, %p1566_p1 }
  0x33   :  { %1383 = vmatprep.mubr.msk.f32.mxu0 %vm1621_vm0, %v1620_v0  ;;  %742 = vadd.xlane.f32.xlu1 %v741_v59 }
  0xb5   :  { %v236_v27 = vpop.xlane.xlu0 %235 }
  0xb6   :  { %v237_v28 = vmax.f32 %v236_v27, 1.0  ;;  %v836_v27 = vld [vmem:[#allocation7 + $0x4] sm:$0x1] }
  0xb7   :  { %v574_v62 = vpop.xlane.xlu1 %573 }
  0xb8   :  { %v575_v63 = vmax.f32 %v574_v62, 1.0 }
  0xb9   :  { %v405_v60 = vpop.xlane.xlu0 %404 }
  0xba   :  { %v406_v61 = vmax.f32 %v405_v60, 1.0 }
  0xf2   :  { %v144_v9 = vpop.f32.mrf.mxu0 }
  0xf3   :  { %v145_v10 = vadd.f32 %v1701_v8, %v144_v9 }
  0xf4   :  { %v1364_v11 = vpop.f32.mrf.mxu0 }
  0xf5   :  { %v149_v12 = vmul.f32 0.044715, %v145_v10  ;;  %v148_v18 = vmul.f32 0.5, %v145_v10 }
  0xf7   :  { %v150_v13 = vmul.f32 %v149_v12, %v145_v10 }
  0xf9   :  { %v151_v14 = vmul.f32 %v150_v13, %v145_v10 }
  0xfb   :  { %v152_v15 = vadd.f32 %v151_v14, %v145_v10 }
  0xfd   :  { %v153_v16 = vmul.f32 0.7978846, %v152_v15 }
  0xff   :  { %1477 = vtanh.f32 %v153_v16 }
 0x100   :  { %1479 = vrcp.f32 %v237_v28  ;;  %v910_v28 = vsel %vm233_vm2, %v836_v27, 0.0 }
 0x101   :  { %911 = vadd.xlane.f32.xlu0 %v910_v28 }
 0x10c   :  { %v1478_v17 = vpop.eup %1477 }
 0x10d   :  { %v155_v19 = vadd.f32 1.0, %v1478_v17  ;;  %v1480_v29 = vpop.eup %1479 }
 0x10f   :  { %v156_v20 = vmul.f32 %v155_v19, %v148_v18 }
 0x111   :  { %157 = vst.msk [vmem:[#allocation9] sm:$0xff] %vm74_vm1, %v156_v20  ;;  %1366 = vmatpush3.msra.mxu1 %v156_v20 }
 0x112   :  { %1368 = vmatmul.mubr.msk.f32.vlgmr.msra.gmra.mxu1 %vm159_vm3, %v158_v6  ;;  %1370 = vmatprep.subr.mxu1 %v1620_v0 }
 0x113   :  { %1371 = vmatpush3.msra.mxu1 %v1678_v1  ;;  %1378 = vmatprep.mubr.msk.f32.mxu1 %vm1621_vm0, %v1620_v0 }
 0x114   :  { %1372 = vmatprep.subr.mxu1 %v1620_v0 }
 0x115   :  { %1373 = vmatpush3.msra.mxu1 %v1680_v2 }
 0x116   :  { %1374 = vmatprep.subr.mxu1 %v1620_v0 }
 0x117   :  { %1375 = vmatpush3.msra.mxu1 %v1684_v3 }
 0x118   :  { %1376 = vmatprep.subr.mxu1 %v1620_v0 }
 0x119   :  { %1377 = vmatpush3.msra.mxu1 %v1688_v4 }
 0x11a   :  { %1379 = vmatmul.mubr.msk.f32.vlgmr.msra.gmra.mxu1 %vm74_vm1, %v243_v21  ;;  %1386 = vmatprep.subr.mxu1 %v1620_v0 }
 0x11b   :  { %1387 = vmatpush3.msra.mxu1 %v1678_v1  ;;  %1394 = vmatprep.mubr.msk.f32.mxu1 %vm1621_vm0, %v1620_v0 }
 0x11c   :  { %1388 = vmatprep.subr.mxu1 %v1620_v0 }
 0x11d   :  { %1389 = vmatpush3.msra.mxu1 %v1680_v2 }
 0x11e   :  { %1390 = vmatprep.subr.mxu1 %v1620_v0 }
 0x11f   :  { %1391 = vmatpush3.msra.mxu1 %v1684_v3 }
 0x120   :  { %1392 = vmatprep.subr.mxu1 %v1620_v0 }
 0x121   :  { %1393 = vmatpush3.msra.mxu1 %v1688_v4 }
 0x122   :  { %1395 = vmatmul.mubr.msk.f32.vlgmr.msra.gmra.mxu1 %vm74_vm1, %v412_v22  ;;  %1413 = vmatprep.subr.mxu1 %v1620_v0 }
 0x123   :  { %1415 = vmatprep.mubr.msk.f32.mxu1 %vm1621_vm0, %v1620_v0 }
 0x1d2   :  { %v229_v30 = vpop.f32.mrf.mxu1 }
 0x1d3   :  { %v239_v31 = vmul.f32 %v1480_v29, %v229_v30  ;;  %v743_v29 = vpop.xlane.xlu1 %742 }
 0x1d4   :  { %v1369_v32 = vpop.f32.mrf.mxu1  ;;  %v744_v30 = vmax.f32 %v743_v29, 1.0 }
 0x1d5   :  { %241 = vst.msk [vmem:[#allocation8] sm:$0x1] %vm240_vm4, %v239_v31 }
 0x1da   :  { %v313_v33 = vpop.f32.mrf.mxu1 }
 0x1db   :  { %v314_v34 = vadd.f32 %v1701_v8, %v313_v33 }
 0x1dc   :  { %v1380_v35 = vpop.f32.mrf.mxu1 }
 0x1dd   :  { %v318_v36 = vmul.f32 0.044715, %v314_v34  ;;  %v317_v50 = vmul.f32 0.5, %v314_v34 }
 0x1df   :  { %v319_v37 = vmul.f32 %v318_v36, %v314_v34 }
 0x1e1   :  { %v320_v38 = vmul.f32 %v319_v37, %v314_v34 }
 0x1e2   :  { %v482_v39 = vpop.f32.mrf.mxu1 }
 0x1e3   :  { %v321_v40 = vadd.f32 %v320_v38, %v314_v34  ;;  %v483_v41 = vadd.f32 %v1701_v8, %v482_v39 }
 0x1e4   :  { %v1396_v42 = vpop.f32.mrf.mxu1 }
 0x1e5   :  { %v487_v43 = vmul.f32 0.044715, %v483_v41  ;;  %v322_v44 = vmul.f32 0.7978846, %v321_v40  ;;  %v486_v54 = vmul.f32 0.5, %v483_v41 }
 0x1e7   :  { %v488_v45 = vmul.f32 %v487_v43, %v483_v41  ;;  %1481 = vtanh.f32 %v322_v44 }
 0x1e9   :  { %v489_v46 = vmul.f32 %v488_v45, %v483_v41 }
 0x1eb   :  { %v490_v47 = vadd.f32 %v489_v46, %v483_v41 }
 0x1ed   :  { %v491_v48 = vmul.f32 0.7978846, %v490_v47  ;;  %v919_v47 = vld [vmem:[#allocation2 + $0x28] sm:$0xff] }
 0x1ef   :  { %1483 = vtanh.f32 %v491_v48  ;;  %v1005_v48 = vld [vmem:[#allocation7 + $0x5] sm:$0x1] }
 0x1f0   :  { %1485 = vrcp.f32 %v406_v61 }
 0x1f1   :  { %1487 = vrcp.f32 %v575_v63 }
 0x1f4   :  { %v1482_v49 = vpop.eup %1481 }
 0x1f5   :  { %v324_v51 = vadd.f32 1.0, %v1482_v49  ;;  %v1079_v49 = vsel %vm233_vm2, %v1005_v48, 0.0 }
 0x1f6   :  { %1080 = vadd.xlane.f32.xlu1 %v1079_v49 }
 0x1f7   :  { %v325_v52 = vmul.f32 %v324_v51, %v317_v50  ;;  %v912_v50 = vpop.xlane.xlu0 %911 }
 0x1f8   :  { %v913_v51 = vmax.f32 %v912_v50, 1.0 }
 0x1f9   :  { %327 = vst.msk [vmem:[#allocation9 + $0x8] sm:$0xff] %vm74_vm1, %v325_v52  ;;  %1382 = vmatpush3.msra.mxu0 %v325_v52 }
 0x1fa   :  { %1384 = vmatmul.mubr.msk.f32.vlgmr.msra.gmra.mxu0 %vm159_vm3, %v329_v23  ;;  %1397 = vmatprep.subr.mxu0 %v1620_v0 }
 0x1fb   :  { %1399 = vmatprep.mubr.msk.f32.mxu0 %vm1621_vm0, %v1620_v0 }
 0x1fc   :  { %v1484_v53 = vpop.eup %1483 }
 0x1fd   :  { %v493_v55 = vadd.f32 1.0, %v1484_v53  ;;  %v1486_v5 = vpop.eup %1485 }
 0x1fe   :  { %v1488_v10 = vpop.eup %1487 }
 0x1ff   :  { %v494_v56 = vmul.f32 %v493_v55, %v486_v54 }
 0x201   :  { %496 = vst.msk [vmem:[#allocation9 + $0x10] sm:$0xff] %vm74_vm1, %v494_v56  ;;  %1398 = vmatpush3.msra.mxu0 %v494_v56 }
 0x202   :  { %1400 = vmatmul.mubr.msk.f32.vlgmr.msra.gmra.mxu0 %vm159_vm3, %v498_v24  ;;  %1402 = vmatprep.subr.mxu0 %v1620_v0 }
 0x203   :  { %1403 = vmatpush3.msra.mxu0 %v1678_v1  ;;  %1410 = vmatprep.mubr.msk.f32.mxu0 %vm1621_vm0, %v1620_v0 }
 0x204   :  { %1404 = vmatprep.subr.mxu0 %v1620_v0 }
 0x205   :  { %1405 = vmatpush3.msra.mxu0 %v1680_v2 }
 0x206   :  { %1406 = vmatprep.subr.mxu0 %v1620_v0 }
 0x207   :  { %1407 = vmatpush3.msra.mxu0 %v1684_v3 }
 0x208   :  { %1408 = vmatprep.subr.mxu0 %v1620_v0 }
 0x209   :  { %1409 = vmatpush3.msra.mxu0 %v1688_v4 }
 0x20a   :  { %1411 = vmatmul.mubr.msk.f32.vlgmr.msra.gmra.mxu0 %vm74_vm1, %v581_v57  ;;  %1429 = vmatprep.subr.mxu0 %v1620_v0 }
 0x20b   :  { %1431 = vmatprep.mubr.msk.f32.mxu0 %vm1621_vm0, %v1620_v0 }
 0x2ba   :  { %v399_v6 = vpop.f32.mrf.mxu0 }
 0x2bb   :  { %v408_v7 = vmul.f32 %v1486_v5, %v399_v6 }
 0x2bc   :  { %v1385_v9 = vpop.f32.mrf.mxu0 }
 0x2bd   :  { %410 = vst.msk [vmem:[#allocation8 + $0x1] sm:$0x1] %vm240_vm4, %v408_v7 }
 0x2c2   :  { %v568_v11 = vpop.f32.mrf.mxu0 }
 0x2c3   :  { %v577_v12 = vmul.f32 %v1488_v10, %v568_v11  ;;  %v1088_v10 = vld [vmem:[#allocation2 + $0x30] sm:$0xff]  ;;  %v1174_v11 = vld [vmem:[#allocation7 + $0x6] sm:$0x1] }
 0x2c4   :  { %v1401_v13 = vpop.f32.mrf.mxu0 }
 0x2c5   :  { %579 = vst.msk [vmem:[#allocation8 + $0x2] sm:$0x1] %vm240_vm4, %v577_v12  ;;  %v1081_v12 = vpop.xlane.xlu1 %1080 }
 0x2c6   :  { %v1082_v13 = vmax.f32 %v1081_v12, 1.0 }
 0x2ca   :  { %v651_v14 = vpop.f32.mrf.mxu0 }
 0x2cb   :  { %v652_v15 = vadd.f32 %v1701_v8, %v651_v14 }
 0x2cc   :  { %v1412_v16 = vpop.f32.mrf.mxu0 }
 0x2cd   :  { %v656_v17 = vmul.f32 0.044715, %v652_v15  ;;  %v655_v23 = vmul.f32 0.5, %v652_v15 }
 0x2cf   :  { %v657_v18 = vmul.f32 %v656_v17, %v652_v15 }
 0x2d1   :  { %v658_v19 = vmul.f32 %v657_v18, %v652_v15 }
 0x2d3   :  { %v659_v20 = vadd.f32 %v658_v19, %v652_v15 }
 0x2d5   :  { %v660_v21 = vmul.f32 0.7978846, %v659_v20 }
 0x2d7   :  { %1489 = vtanh.f32 %v660_v21 }
 0x2d8   :  { %1491 = vrcp.f32 %v744_v30 }
 0x2e4   :  { %v1490_v22 = vpop.eup %1489 }
 0x2e5   :  { %v662_v24 = vadd.f32 1.0, %v1490_v22  ;;  %v1492_v31 = vpop.eup %1491 }
 0x2e7   :  { %v663_v25 = vmul.f32 %v662_v24, %v655_v23 }
 0x2e9   :  { %665 = vst.msk [vmem:[#allocation9 + $0x18] sm:$0xff] %vm74_vm1, %v663_v25  ;;  %1414 = vmatpush3.msra.mxu1 %v663_v25 }
 0x2ea   :  { %1416 = vmatmul.mubr.msk.f32.vlgmr.msra.gmra.mxu1 %vm159_vm3, %v667_v58  ;;  %1418 = vmatprep.subr.mxu1 %v1620_v0 }
 0x2eb   :  { %1419 = vmatpush3.msra.mxu1 %v1678_v1  ;;  %1426 = vmatprep.mubr.msk.f32.mxu1 %vm1621_vm0, %v1620_v0 }
 0x2ec   :  { %1420 = vmatprep.subr.mxu1 %v1620_v0 }
 0x2ed   :  { %1421 = vmatpush3.msra.mxu1 %v1680_v2 }
 0x2ee   :  { %1422 = vmatprep.subr.mxu1 %v1620_v0 }
 0x2ef   :  { %1423 = vmatpush3.msra.mxu1 %v1684_v3 }
 0x2f0   :  { %1424 = vmatprep.subr.mxu1 %v1620_v0 }
 0x2f1   :  { %1425 = vmatpush3.msra.mxu1 %v1688_v4 }
 0x2f2   :  { %1427 = vmatmul.mubr.msk.f32.vlgmr.msra.gmra.mxu1 %vm74_vm1, %v750_v26  ;;  %1445 = vmatprep.subr.mxu1 %v1620_v0 }
 0x2f3   :  { %1447 = vmatprep.mubr.msk.f32.mxu1 %vm1621_vm0, %v1620_v0 }
 0x3aa   :  { %v737_v32 = vpop.f32.mrf.mxu1 }
 0x3ab   :  { %v746_v33 = vmul.f32 %v1492_v31, %v737_v32 }
 0x3ac   :  { %v1417_v34 = vpop.f32.mrf.mxu1 }
 0x3ad   :  { %748 = vst.msk [vmem:[#allocation8 + $0x3] sm:$0x1] %vm240_vm4, %v746_v33 }
 0x3b2   :  { %v820_v35 = vpop.f32.mrf.mxu1 }
 0x3b3   :  { %v821_v36 = vadd.f32 %v1701_v8, %v820_v35 }
 0x3b4   :  { %v1428_v37 = vpop.f32.mrf.mxu1 }
 0x3b5   :  { %v825_v38 = vmul.f32 0.044715, %v821_v36  ;;  %v824_v44 = vmul.f32 0.5, %v821_v36 }
 0x3b7   :  { %v826_v39 = vmul.f32 %v825_v38, %v821_v36 }
 0x3b9   :  { %v827_v40 = vmul.f32 %v826_v39, %v821_v36 }
 0x3bb   :  { %v828_v41 = vadd.f32 %v827_v40, %v821_v36 }
 0x3bd   :  { %v829_v42 = vmul.f32 0.7978846, %v828_v41 }
 0x3bf   :  { %1493 = vtanh.f32 %v829_v42 }
 0x3c0   :  { %1495 = vrcp.f32 %v913_v51 }
 0x3cc   :  { %v1494_v43 = vpop.eup %1493 }
 0x3cd   :  { %v831_v45 = vadd.f32 1.0, %v1494_v43  ;;  %v1496_v52 = vpop.eup %1495 }
 0x3cf   :  { %v832_v46 = vmul.f32 %v831_v45, %v824_v44 }
 0x3d1   :  { %834 = vst.msk [vmem:[#allocation9 + $0x20] sm:$0xff] %vm74_vm1, %v832_v46  ;;  %1430 = vmatpush3.msra.mxu0 %v832_v46 }
 0x3d2   :  { %1432 = vmatmul.mubr.msk.f32.vlgmr.msra.gmra.mxu0 %vm159_vm3, %v836_v27  ;;  %1434 = vmatprep.subr.mxu0 %v1620_v0 }
 0x3d3   :  { %1435 = vmatpush3.msra.mxu0 %v1678_v1  ;;  %1442 = vmatprep.mubr.msk.f32.mxu0 %vm1621_vm0, %v1620_v0 }
 0x3d4   :  { %1436 = vmatprep.subr.mxu0 %v1620_v0 }
 0x3d5   :  { %1437 = vmatpush3.msra.mxu0 %v1680_v2 }
 0x3d6   :  { %1438 = vmatprep.subr.mxu0 %v1620_v0 }
 0x3d7   :  { %1439 = vmatpush3.msra.mxu0 %v1684_v3 }
 0x3d8   :  { %1440 = vmatprep.subr.mxu0 %v1620_v0 }
 0x3d9   :  { %1441 = vmatpush3.msra.mxu0 %v1688_v4 }
 0x3da   :  { %1443 = vmatmul.mubr.msk.f32.vlgmr.msra.gmra.mxu0 %vm74_vm1, %v919_v47  ;;  %1461 = vmatprep.subr.mxu0 %v1620_v0 }
 0x3db   :  { %1463 = vmatprep.mubr.msk.f32.mxu0 %vm1621_vm0, %v1620_v0 }
 0x492   :  { %v906_v53 = vpop.f32.mrf.mxu0 }
 0x493   :  { %v915_v54 = vmul.f32 %v1496_v52, %v906_v53 }
 0x494   :  { %v1433_v55 = vpop.f32.mrf.mxu0 }
 0x495   :  { %917 = vst.msk [vmem:[#allocation8 + $0x4] sm:$0x1] %vm240_vm4, %v915_v54 }
 0x49a   :  { %v989_v56 = vpop.f32.mrf.mxu0 }
 0x49b   :  { %v990_v57 = vadd.f32 %v1701_v8, %v989_v56 }
 0x49c   :  { %v1444_v58 = vpop.f32.mrf.mxu0 }
 0x49d   :  { %v994_v59 = vmul.f32 0.044715, %v990_v57  ;;  %v993_v6 = vmul.f32 0.5, %v990_v57 }
 0x49f   :  { %v995_v60 = vmul.f32 %v994_v59, %v990_v57 }
 0x4a1   :  { %v996_v61 = vmul.f32 %v995_v60, %v990_v57 }
 0x4a3   :  { %v997_v62 = vadd.f32 %v996_v61, %v990_v57 }
 0x4a5   :  { %v998_v63 = vmul.f32 0.7978846, %v997_v62 }
 0x4a7   :  { %1497 = vtanh.f32 %v998_v63 }
 0x4a8   :  { %1499 = vrcp.f32 %v1082_v13 }
 0x4b4   :  { %v1498_v5 = vpop.eup %1497 }
 0x4b5   :  { %v1000_v7 = vadd.f32 1.0, %v1498_v5  ;;  %v1500_v14 = vpop.eup %1499 }
 0x4b7   :  { %v1001_v9 = vmul.f32 %v1000_v7, %v993_v6 }
 0x4b9   :  { %1003 = vst.msk [vmem:[#allocation9 + $0x28] sm:$0xff] %vm74_vm1, %v1001_v9  ;;  %1446 = vmatpush3.msra.mxu1 %v1001_v9 }
 0x4ba   :  { %1448 = vmatmul.mubr.msk.f32.vlgmr.msra.gmra.mxu1 %vm159_vm3, %v1005_v48  ;;  %1450 = vmatprep.subr.mxu1 %v1620_v0 }
 0x4bb   :  { %1451 = vmatpush3.msra.mxu1 %v1678_v1  ;;  %1458 = vmatprep.mubr.msk.f32.mxu1 %vm1621_vm0, %v1620_v0  ;;  %v1248_v1 = vsel %vm233_vm2, %v1174_v11, 0.0 }
 0x4bc   :  { %1452 = vmatprep.subr.mxu1 %v1620_v0  ;;  %1249 = vadd.xlane.f32.xlu0 %v1248_v1 }
 0x4bd   :  { %1453 = vmatpush3.msra.mxu1 %v1680_v2 }
 0x4be   :  { %1454 = vmatprep.subr.mxu1 %v1620_v0 }
 0x4bf   :  { %1455 = vmatpush3.msra.mxu1 %v1684_v3 }
 0x4c0   :  { %1456 = vmatprep.subr.mxu1 %v1620_v0 }
 0x4c1   :  { %1457 = vmatpush3.msra.mxu1 %v1688_v4 }
 0x4c2   :  { %1459 = vmatmul.mubr.msk.f32.vlgmr.msra.gmra.mxu1 %vm74_vm1, %v1088_v10 }
 0x57a   :  { %v1075_v2 = vpop.f32.mrf.mxu1 }
 0x57b   :  { %v1084_v15 = vmul.f32 %v1500_v14, %v1075_v2 }
 0x57c   :  { %v1449_v16 = vpop.f32.mrf.mxu1 }
 0x57d   :  { %1086 = vst.msk [vmem:[#allocation8 + $0x5] sm:$0x1] %vm240_vm4, %v1084_v15 }
 0x582   :  { %v1158_v3 = vpop.f32.mrf.mxu1 }
 0x583   :  { %v1159_v0 = vadd.f32 %v1701_v8, %v1158_v3 }
 0x584   :  { %v1460_v17 = vpop.f32.mrf.mxu1 }
 0x585   :  { %v1163_v4 = vmul.f32 0.044715, %v1159_v0  ;;  %v1162_v23 = vmul.f32 0.5, %v1159_v0 }
 0x587   :  { %v1164_v18 = vmul.f32 %v1163_v4, %v1159_v0 }
 0x589   :  { %v1165_v19 = vmul.f32 %v1164_v18, %v1159_v0 }
 0x58b   :  { %v1166_v20 = vadd.f32 %v1165_v19, %v1159_v0 }
 0x58d   :  { %v1167_v21 = vmul.f32 0.7978846, %v1166_v20 }
 0x58f   :  { %1501 = vtanh.f32 %v1167_v21 }
 0x59c   :  { %v1502_v22 = vpop.eup %1501 }
 0x59d   :  { %v1169_v24 = vadd.f32 1.0, %v1502_v22 }
 0x59f   :  { %v1170_v25 = vmul.f32 %v1169_v24, %v1162_v23 }
 0x5a1   :  { %1172 = vst.msk [vmem:[#allocation9 + $0x30] sm:$0xff] %vm74_vm1, %v1170_v25  ;;  %1462 = vmatpush3.msra.mxu0 %v1170_v25 }
 0x5a2   :  { %1464 = vmatmul.mubr.msk.f32.vlgmr.msra.gmra.mxu0 %vm159_vm3, %v1174_v11 }
 0x5a3   :  { %1576 = shalt.err (!%p1573_p5)
}
 0x5a4   :  { %1279 = dma.vmem_to_hbm [thread:$0]  %s1274_s12, 896, %s1835_s5, [#allocation10], %s1615_s23, %s1615_s23, %s1616_s24   ;;  %v1250_v8 = vpop.xlane.xlu0 %1249 }
 0x5a5   :  { %v1251_v26 = vmax.f32 %v1250_v8, 1.0  ;;  %s1623_s16 = smov [#allocation8]  }
 0x5a6   :  { %s1261_s17 = sshll.u32 %s1623_s16, 4  ;;  %s1262_s17 = int_to_ptr.vmem [resolvable:$true] %s1261_s17 }
 0x5a7   :  { %1503 = vrcp.f32 %v1251_v26  ;;  %s1585_s18 = scalar_lea.vmem %s1262_s17, 112  ;;  %s1589_s19 = scalar_lea.vmem %s1262_s17, 128 }
 0x5a8   :  { %p1586_p6 = scmp.ne.s32.totalorder %s1262_s17, %s1585_s18  ;;  %p1590_p7 = scmp.lt.s32.totalorder %s1262_s17, %s1262_s17 }
 0x5a9   :  { %p1591_p8 = scmp.lt.s32.totalorder %s1589_s19, %s1585_s18 }
 0x5ab   :  { %p1592_p9 = por %p1591_p8, %p1590_p7 }
 0x5ad   :  { %p1593_p10 = pnand %p1592_p9, %p1586_p6 }
 0x5b4   :  { %v1504_v27 = vpop.eup %1503 }
 0x662   :  { %v1244_v28 = vpop.f32.mrf.mxu0 }
 0x663   :  { %v1253_v29 = vmul.f32 %v1504_v27, %v1244_v28 }
 0x664   :  { %v1465_v30 = vpop.f32.mrf.mxu0 }
 0x665   :  { %1255 = vst.msk [vmem:[#allocation8 + $0x6] sm:$0x1] %vm240_vm4, %v1253_v29 }
 0x666   :  { %1596 = shalt.err (!%p1593_p10)
}
 0x667   :  { %1267 = dma.vmem_to_hbm [thread:$0]  %s1262_s17, 112, %s1834_s4, [#allocation4], %s1618_s8, %s1618_s8, %s1619_s9  }
 0x668   :  { %1609 = dma.done.wait [#allocation4], 112  }
 0x669   :  { %1610 = vsyncadd [#allocation4], 4294967184 }
 0x66a   :  { %1611 = dma.done.wait [#allocation10], 896  }
 0x66b   :  { %1612 = vsyncadd [#allocation10], 4294966400 }
 0x66c   :  { %1286 = vsyncpa [#allocation3], 1 }
 0x66d   :  { %1287 = vsyncpa [#allocation6], 1 }
 0x66e   :  { %1288 = vsyncpa [#allocation4], 1 }
 0x66f   :  { %1289 = vsyncpa [#allocation10], 1 }

</bundles_post_ra>
